<compile_context>
chip_gen: v7x
topology: tpu7x:2x2x1
jax: 0.10.0
libtpu: 0.0.40
codegen_flags: <defaults>
</compile_context>

<pallas_src>
import functools

import jax
import jax.numpy as jnp
from jax.experimental import pallas as pl
from jax.experimental.pallas import tpu as pltpu


# ---------------- conv1 + bn1 + relu : tiled im2col matmul ----------------

def _conv_bn_relu_kernel(p_ref, w_ref, b_ref, o_ref):
    # (tile_m, 147) @ (147, 64) on the MXU (bf16 operands, f32 accumulation),
    # fused bias add (BN scale already folded into the weights) + ReLU,
    # bf16 store.
    acc = jnp.dot(p_ref[...], w_ref[...], preferred_element_type=jnp.float32)
    o_ref[...] = jnp.maximum(acc + b_ref[...], 0.0).astype(o_ref.dtype)


def conv_bn_relu(patches, w_mat, bias, tile_m):
    M, K = patches.shape
    _, C = w_mat.shape
    return pl.pallas_call(
        _conv_bn_relu_kernel,
        out_shape=jax.ShapeDtypeStruct((M, C), jnp.bfloat16),
        grid=(M // tile_m,),
        in_specs=[
            pl.BlockSpec((tile_m, K), lambda i: (i, 0)),   # streamed patches (dbl-buffered)
            pl.BlockSpec((K, C), lambda i: (0, 0)),        # VMEM-resident weights
            pl.BlockSpec((1, C), lambda i: (0, 0)),        # VMEM-resident bias
        ],
        out_specs=pl.BlockSpec((tile_m, C), lambda i: (i, 0)),
        compiler_params=pltpu.CompilerParams(
            dimension_semantics=("parallel",),
            vmem_limit_bytes=32 * 1024 * 1024,             # safe on v5e/v6e/v7x
        ),
    )(patches, w_mat, bias)


# ---------------- maxpool 3x3 / stride 2 / pad 1 (parity layout) ----------------

def _maxpool_kernel(oh, ow, poh, pow_, y_ref, o_ref):
    # y_ref block: (1, 2, POH, 2, POW, C) bf16, where
    #   y_ref[0, rp, p, cp, q, :] = relu_conv[2p + rp, 2q + cp, :].
    ev_e = y_ref[0, 0, :, 0, :, :]          # a[2p,   2q  ]  (POH, POW, C)
    ev_o = y_ref[0, 0, :, 1, :, :]          # a[2p,   2q+1]
    od_e = y_ref[0, 1, :, 0, :, :]          # a[2p+1, 2q  ]
    od_o = y_ref[0, 1, :, 1, :, :]          # a[2p+1, 2q+1]

    # Values are post-ReLU (>= 0), so 0-fill at the borders is exact for max.
    if oh % 2 == 1:                         # odd conv-row plane overruns by one row
        rmask = jax.lax.broadcasted_iota(jnp.int32, (poh, 1, 1), 0) < poh - 1
        od_e = jnp.where(rmask, od_e, 0)
        od_o = jnp.where(rmask, od_o, 0)
    if ow % 2 == 1:                         # odd conv-col plane overruns by one col
        cmask = jax.lax.broadcasted_iota(jnp.int32, (1, pow_, 1), 1) < pow_ - 1
        ev_o = jnp.where(cmask, ev_o, 0)
        od_o = jnp.where(cmask, od_o, 0)

    c = ev_e.shape[-1]
    zrow = jnp.zeros((1, pow_, c), ev_e.dtype)
    od_e_up = jnp.concatenate([zrow, od_e[:poh - 1]], axis=0)          # a[2p-1, 2q  ]
    od_o_up = jnp.concatenate([zrow, od_o[:poh - 1]], axis=0)          # a[2p-1, 2q+1]

    # Separable 3x3 max: 3 row taps per column parity, then 3 column taps.
    rmax_e = jnp.maximum(jnp.maximum(ev_e, od_e), od_e_up)             # col 2q
    rmax_o = jnp.maximum(jnp.maximum(ev_o, od_o), od_o_up)             # col 2q+1
    zcol = jnp.zeros((poh, 1, c), ev_e.dtype)
    rmax_o_left = jnp.concatenate([zcol, rmax_o[:, :pow_ - 1, :]], axis=1)  # col 2q-1
    out = jnp.maximum(jnp.maximum(rmax_e, rmax_o), rmax_o_left)
    o_ref[0] = out.astype(o_ref.dtype)


def maxpool_3x3_s2_p1(y6, oh, ow):
    N, _, POH, _, POW, C = y6.shape
    kernel = functools.partial(_maxpool_kernel, oh, ow, POH, POW)
    return pl.pallas_call(
        kernel,
        out_shape=jax.ShapeDtypeStruct((N, POH, POW, C), jnp.float32),
        grid=(N,),
        in_specs=[pl.BlockSpec((1, 2, POH, 2, POW, C),
                               lambda n: (n, 0, 0, 0, 0, 0))],
        out_specs=pl.BlockSpec((1, POH, POW, C), lambda n: (n, 0, 0, 0)),
        compiler_params=pltpu.CompilerParams(
            dimension_semantics=("parallel",),
            vmem_limit_bytes=32 * 1024 * 1024,
        ),
    )(y6)


# ---------------- wrapper glue (layout / patch extraction, plain JAX) ----------------

def _pick_tile_m(m, cap=4096):
    """Largest multiple-of-8 divisor of m that is <= cap (falls back to m)."""
    best = None
    t = 8
    while t <= min(cap, m):
        if m % t == 0:
            best = t
        t += 8
    return best if best is not None else m


def _im2col_pool_parity(xpad, poh, pow_):
    """im2col for the 7x7/s2 conv with rows emitted in pool-parity order.

    Row m = (n, rp, pi, cp, qi) holds the patch of conv output position
    (oh = 2*pi + rp, ow = 2*qi + cp); K ordering is (tap i, tap j, cin).
    """
    N, Cin = xpad.shape[0], xpad.shape[1]
    per_rp = []
    for rp in range(2):
        per_cp = []
        for cp in range(2):
            taps = []
            for i in range(7):
                for j in range(7):
                    r0 = 2 * rp + i
                    c0 = 2 * cp + j
                    taps.append(xpad[:, :,
                                     r0:r0 + 4 * (poh - 1) + 1:4,
                                     c0:c0 + 4 * (pow_ - 1) + 1:4])
            p = jnp.stack(taps, axis=0)                 # (49, N, Cin, POH, POW)
            p = jnp.transpose(p, (1, 3, 4, 0, 2))       # (N, POH, POW, 49, Cin)
            per_cp.append(p.reshape(N, poh, pow_, 49 * Cin))
        per_rp.append(jnp.stack(per_cp, axis=2))        # (N, POH, 2, POW, K)
    patches = jnp.stack(per_rp, axis=1)                 # (N, 2, POH, 2, POW, K)
    return patches.reshape(N * 4 * poh * pow_, 49 * Cin)


def thermal_module_forward(x_nchw, params):
    """share_net=1 eval-mode forward: conv1 -> bn1 -> relu -> maxpool.  NCHW out."""
    w = params["conv1_w"]
    gamma, beta = params["bn1_gamma"], params["bn1_beta"]
    mean, var = params["bn1_mean"], params["bn1_var"]
    eps = 1e-5

    N, Cin, H, W = x_nchw.shape
    Cout = w.shape[0]
    OH = (H - 1) // 2 + 1          # conv 7x7 / s2 / p3
    OW = (W - 1) // 2 + 1
    POH = (OH - 1) // 2 + 1        # maxpool 3x3 / s2 / p1
    POW = (OW - 1) // 2 + 1

    # Fold BN (eval mode) into the weights / a per-channel bias, round to bf16 once.
    scale = gamma / jnp.sqrt(var + eps)
    w_eff = (w * scale[:, None, None, None]).astype(jnp.bfloat16)     # (Cout,Cin,7,7)
    w_mat = jnp.transpose(w_eff, (2, 3, 1, 0)).reshape(49 * Cin, Cout)
    bias = (beta - mean * scale).reshape(1, Cout).astype(jnp.float32)

    # Zero-pad so every tap (including parity-rounded conv rows/cols) is in range.
    Hp = 4 * POH + 5
    Wp = 4 * POW + 5
    xpad = jnp.pad(x_nchw.astype(jnp.bfloat16),
                   ((0, 0), (0, 0), (3, Hp - H - 3), (3, Wp - W - 3)))

    patches = _im2col_pool_parity(xpad, POH, POW)        # (M, 147) bf16, unpadded K
    M, _ = patches.shape
    tile_m = _pick_tile_m(M)

    y = conv_bn_relu(patches, w_mat, bias, tile_m)       # (M, Cout) bf16
    y6 = y.reshape(N, 2, POH, 2, POW, Cout)              # free bitcast (same bytes)
    p = maxpool_3x3_s2_p1(y6, OH, OW)                    # (N, POH, POW, Cout) f32
    return jnp.transpose(p, (0, 3, 1, 2))                # NCHW, matches PyTorch


# ---------------- reference (plain JAX) for silent correctness checks ----------------

def reference_forward(x_nchw, params, match_kernel_rounding=False):
    eps = 1e-5
    w = params["conv1_w"]
    scale = params["bn1_gamma"] / jnp.sqrt(params["bn1_var"] + eps)
    bias = params["bn1_beta"] - params["bn1_mean"] * scale
    if match_kernel_rounding:
        # Mirror the kernel: bf16 input, BN-scale folded + bf16 weights,
        # f32 accumulation, f32 bias + ReLU, bf16 activation, f32 pool.
        xin = x_nchw.astype(jnp.bfloat16)
        w_eff = (w * scale[:, None, None, None]).astype(jnp.bfloat16)
        y = jax.lax.conv_general_dilated(
            xin, w_eff, window_strides=(2, 2), padding=((3, 3), (3, 3)),
            dimension_numbers=("NCHW", "OIHW", "NCHW"),
            preferred_element_type=jnp.float32)
        y = jnp.maximum(y + bias[None, :, None, None], 0.0)
        y = y.astype(jnp.bfloat16).astype(jnp.float32)
    else:
        y = jax.lax.conv_general_dilated(
            x_nchw, w, window_strides=(2, 2), padding=((3, 3), (3, 3)),
            dimension_numbers=("NCHW", "OIHW", "NCHW"))
        y = jnp.maximum(y * scale[None, :, None, None] + bias[None, :, None, None], 0.0)
    return jax.lax.reduce_window(y, -jnp.inf, jax.lax.max,
                                 window_dimensions=(1, 1, 3, 3),
                                 window_strides=(1, 1, 2, 2),
                                 padding=((0, 0), (0, 0), (1, 1), (1, 1)))


# ---------------- main ----------------

if __name__ == "__main__":
    key = jax.random.PRNGKey(0)
    k_x, k_w, k_g, k_b, k_m, k_v = jax.random.split(key, 6)

    N, Cin, H, W = 2, 3, 16, 16
    Cout, KH, KW = 64, 7, 7

    x = jax.random.normal(k_x, (N, Cin, H, W), dtype=jnp.float32)
    params = {
        "conv1_w": 0.1 * jax.random.normal(k_w, (Cout, Cin, KH, KW), jnp.float32),
        "bn1_gamma": 1.0 + 0.1 * jax.random.normal(k_g, (Cout,), jnp.float32),
        "bn1_beta": 0.1 * jax.random.normal(k_b, (Cout,), jnp.float32),
        "bn1_mean": 0.1 * jax.random.normal(k_m, (Cout,), jnp.float32),
        "bn1_var": jnp.abs(jax.random.normal(k_v, (Cout,), jnp.float32)) + 0.5,
    }

    out = jax.block_until_ready(thermal_module_forward(x, params))

    ref_match = jax.block_until_ready(
        reference_forward(x, params, match_kernel_rounding=True))
    ref_f32 = jax.block_until_ready(reference_forward(x, params))

    assert out.shape == ref_f32.shape == (N, Cout, 4, 4), (out.shape, ref_f32.shape)
    # Tight-ish check vs a reference with identical roundings (slack covers a
    # possible 1-ulp bf16 flip from MXU-vs-XLA f32 accumulation order).
    err_match = float(jnp.max(jnp.abs(out - ref_match)))
    assert err_match < 7e-2, err_match
    # Loose check vs the pure-f32 module math (slack for bf16 operand +
    # activation rounding).
    err_f32 = float(jnp.max(jnp.abs(out - ref_f32)))
    assert err_f32 < 1.5e-1, err_f32

    print("KERNEL_OK")
</pallas_src>

<mosaic_0001>
module attributes {stable_mosaic.version = 11 : i64} {
  func.func @_conv_bn_relu_kernel(%arg0: i32, %arg1: memref<128x147xbf16, #tpu.memory_space<vmem>>, %arg2: memref<147x64xbf16, #tpu.memory_space<vmem>>, %arg3: memref<1x64xf32, #tpu.memory_space<vmem>>, %arg4: memref<128x64xbf16, #tpu.memory_space<vmem>>) attributes {dimension_semantics = [#tpu.dimension_semantics<parallel>], iteration_bounds = array<i64: 1>, scalar_prefetch = 0 : i64, scratch_operands = 0 : i64, tpu.core_type = #tpu.core_type<tc>, window_params = [{transform_indices = @transform_0, window_bounds = array<i64: 128, 147>}, {pipeline_mode = #tpu.pipeline_mode<synchronous>, transform_indices = @transform_1, window_bounds = array<i64: 147, 64>}, {pipeline_mode = #tpu.pipeline_mode<synchronous>, transform_indices = @transform_2, window_bounds = array<i64: 1, 64>}, {transform_indices = @transform_3, window_bounds = array<i64: 128, 64>}]} {
    %c0 = arith.constant 0 : index
    %c0_0 = arith.constant 0 : index
    %0 = vector.load %arg1[%c0, %c0_0] : memref<128x147xbf16, #tpu.memory_space<vmem>>, vector<128x147xbf16>
    %c0_1 = arith.constant 0 : index
    %c0_2 = arith.constant 0 : index
    %1 = vector.load %arg2[%c0_1, %c0_2] : memref<147x64xbf16, #tpu.memory_space<vmem>>, vector<147x64xbf16>
    %cst = arith.constant dense<0.000000e+00> : vector<128x64xf32>
    %2 = tpu.matmul %0, %1, %cst {dimension_numbers = #tpu.dot_dimension_numbers<[1], [0], [0], [1], [0, 0, 1, 1], [], []>} : vector<128x147xbf16>, vector<147x64xbf16>, vector<128x64xf32> -> vector<128x64xf32>
    %c0_3 = arith.constant 0 : index
    %c0_4 = arith.constant 0 : index
    %3 = vector.load %arg3[%c0_3, %c0_4] : memref<1x64xf32, #tpu.memory_space<vmem>>, vector<1x64xf32>
    %4 = vector.broadcast %3 : vector<1x64xf32> to vector<128x64xf32>
    %5 = arith.addf %2, %4 : vector<128x64xf32>
    %cst_5 = arith.constant 0.000000e+00 : f32
    %6 = vector.broadcast %cst_5 : f32 to vector<128x64xf32>
    %7 = arith.maximumf %5, %6 : vector<128x64xf32>
    %8 = arith.truncf %7 : vector<128x64xf32> to vector<128x64xbf16>
    %c0_6 = arith.constant 0 : index
    %c0_7 = arith.constant 0 : index
    %9 = vector.load %arg4[%c0_6, %c0_7] : memref<128x64xbf16, #tpu.memory_space<vmem>>, vector<128x64xbf16>
    tpu.vector_store %arg4[%c0_6, %c0_7], %8 {strides = array<i32>} : memref<128x64xbf16, #tpu.memory_space<vmem>>, vector<128x64xbf16>,
    return
  }
  func.func @transform_0(%arg0: i32) -> (i32, i32) {
    %c0_i32 = arith.constant 0 : i32
    %c0_i32_0 = arith.constant 0 : i32
    return %arg0, %c0_i32 : i32, i32
  }
  func.func @transform_1(%arg0: i32) -> (i32, i32) {
    %c0_i32 = arith.constant 0 : i32
    %c0_i32_0 = arith.constant 0 : i32
    %c0_i32_1 = arith.constant 0 : i32
    return %c0_i32, %c0_i32_0 : i32, i32
  }
  func.func @transform_2(%arg0: i32) -> (i32, i32) {
    %c0_i32 = arith.constant 0 : i32
    %c0_i32_0 = arith.constant 0 : i32
    %c0_i32_1 = arith.constant 0 : i32
    return %c0_i32, %c0_i32_0 : i32, i32
  }
  func.func @transform_3(%arg0: i32) -> (i32, i32) {
    %c0_i32 = arith.constant 0 : i32
    %c0_i32_0 = arith.constant 0 : i32
    return %arg0, %c0_i32 : i32, i32
  }
}

</mosaic_0001>

<bundles_post_ra>
// kernel: tpu_custom_call.1
= control target key start
LH: loop header
LB: loop body
LE: loop exit
PB: predicated region body
PF: predicated region fallthrough
CT: control target
= control target key end

     0   :  { %v539_v0 = vmov 0   ;;  %vm186_vm0 = vcmask 154624   ;;  %vm211_vm1 = vcmask 1040384   ;;  %vm212_vm2 = vcmask 1041408   ;;  %s732_s1 = inlined_call_operand.vmem [shape: bf16[147,64], index: 1, kind: input, shape index: {}]   ;;  %s733_s0 = inlined_call_operand.vmem [shape: bf16[128,147], index: 0, kind: input, shape index: {}]   ;;  %s734_s2 = inlined_call_operand.vmem [shape: f32[1,64], index: 2, kind: input, shape index: {}]   ;;  %s735_s3 = inlined_call_operand.vmem [shape: bf16[128,64], index: 3, kind: output, shape index: {}]  }
   0x1   :  { %218 = vmatprep.subr.bf16.mxu0 %v539_v0  ;;  %483 = vmatprep.subr.bf16.mxu1 %v539_v0  ;;  %v505_v1 = vld [vmem:[%s732_s1] sm:$0xff]   ;;  %v506_v2 = vld [vmem:[%s732_s1 + $0x8] sm:$0xff]   ;;  %v507_v3 = vld [vmem:[%s732_s1 + $0x10] sm:$0xff]   ;;  %v540_v11 = vmov 65535   ;;  %vm395_vm3 = vcmask 519168  }
   0x2   :  { %219 = vmatpush1.bf16.msra.mxu0 %v505_v1  ;;  %493 = vmatpush1.bf16.msra.mxu1 %v505_v1  ;;  %v508_v4 = vld [vmem:[%s732_s1 + $0x18] sm:$0xff]   ;;  %v517_v5 = vld [vmem:[%s733_s0 + $0x4] ss:$8 sps:$4 sm:$0xff]   ;;  %v511_v9 = vld [vmem:[%s732_s1 + $0x30] sm:$0xff]   ;;  %v213_v12 = vsel %vm211_vm1, 4294967295, %v540_v11 }
   0x3   :  { %220 = vmatprep.subr.bf16.mxu0 %v539_v0  ;;  %484 = vmatprep.subr.bf16.mxu1 %v539_v0  ;;  %v520_v6 = vld [vmem:[%s733_s0 + $0x44] ss:$8 sps:$4 sm:$0xff]   ;;  %v512_v10 = vld [vmem:[%s732_s1 + $0x38] sm:$0xff]   ;;  %v514_v14 = vld [vmem:[%s732_s1 + $0x48] ss:$0 sps:$4 sm:$0x33]  }
   0x4   :  { %443 = vmatprep.mubr.msk.bf16.mxu0 %vm186_vm0, %v517_v5  ;;  %v509_v7 = vld [vmem:[%s732_s1 + $0x20] sm:$0xff]   ;;  %447 = vmatprep.mubr.msk.bf16.mxu1 %vm186_vm0, %v520_v6  ;;  %v510_v8 = vld [vmem:[%s732_s1 + $0x28] sm:$0xff]   ;;  %v214_v15 = vsel %vm212_vm2, %v213_v12, 0  ;;  %v521_v19 = vld [vmem:[%s733_s0 + $0x14] ss:$8 sps:$4 sm:$0xff]  }
   0x5   :  { %v513_v13 = vld [vmem:[%s732_s1 + $0x40] sm:$0xff]   ;;  %v216_v16 = vand.u32 %v514_v14, %v214_v15  ;;  %v523_v20 = vld [vmem:[%s733_s0 + $0x54] ss:$8 sps:$4 sm:$0xff]   ;;  %v525_v21 = vld [vmem:[%s733_s0 + $0x10] ss:$8 sps:$4 sm:$0xff]  }
   0x6   :  { %221 = vmatpush1.bf16.msra.mxu0 %v506_v2  ;;  %494 = vmatpush1.bf16.msra.mxu1 %v506_v2  ;;  %v515_v17 = vld [vmem:[%s733_s0] ss:$8 sps:$4 sm:$0xff]   ;;  %v526_v22 = vld [vmem:[%s733_s0 + $0x50] ss:$8 sps:$4 sm:$0xff]   ;;  %v527_v23 = vld [vmem:[%s733_s0 + $0x24] ss:$8 sps:$4 sm:$0xff]  }
   0x7   :  { %222 = vmatprep.subr.bf16.mxu0 %v539_v0  ;;  %485 = vmatprep.subr.bf16.mxu1 %v539_v0  ;;  %v518_v18 = vld [vmem:[%s733_s0 + $0x40] ss:$8 sps:$4 sm:$0xff]   ;;  %v529_v24 = vld [vmem:[%s733_s0 + $0x64] ss:$8 sps:$4 sm:$0xff]   ;;  %v533_v27 = vld [vmem:[%s733_s0 + $0x34] ss:$8 sps:$4 sm:$0xff]  }
   0x8   :  { %v531_v25 = vld [vmem:[%s733_s0 + $0x20] ss:$8 sps:$4 sm:$0xff]   ;;  %v535_v28 = vld [vmem:[%s733_s0 + $0x74] ss:$8 sps:$4 sm:$0xff]   ;;  %v537_v29 = vld [vmem:[%s733_s0 + $0x30] ss:$8 sps:$4 sm:$0xff]  }
   0x9   :  { %v532_v26 = vld [vmem:[%s733_s0 + $0x60] ss:$8 sps:$4 sm:$0xff]   ;;  %v538_v30 = vld [vmem:[%s733_s0 + $0x70] ss:$8 sps:$4 sm:$0xff]  }
   0xa   :  { %223 = vmatpush1.bf16.msra.mxu0 %v507_v3  ;;  %495 = vmatpush1.bf16.msra.mxu1 %v507_v3  ;;  %v650_v31 = vld [vmem:[%s734_s2] ss:$0 sm:$0xff] }
   0xb   :  { %224 = vmatprep.subr.bf16.mxu0 %v539_v0  ;;  %486 = vmatprep.subr.bf16.mxu1 %v539_v0 }
   0xe   :  { %225 = vmatpush1.bf16.msra.mxu0 %v508_v4  ;;  %496 = vmatpush1.bf16.msra.mxu1 %v508_v4 }
   0xf   :  { %226 = vmatprep.subr.bf16.mxu0 %v539_v0  ;;  %487 = vmatprep.subr.bf16.mxu1 %v539_v0 }
  0x12   :  { %227 = vmatpush1.bf16.msra.mxu0 %v509_v7  ;;  %497 = vmatpush1.bf16.msra.mxu1 %v509_v7 }
  0x13   :  { %228 = vmatprep.subr.bf16.mxu0 %v539_v0  ;;  %488 = vmatprep.subr.bf16.mxu1 %v539_v0 }
  0x16   :  { %229 = vmatpush1.bf16.msra.mxu0 %v510_v8  ;;  %498 = vmatpush1.bf16.msra.mxu1 %v510_v8 }
  0x17   :  { %230 = vmatprep.subr.bf16.mxu0 %v539_v0  ;;  %489 = vmatprep.subr.bf16.mxu1 %v539_v0 }
  0x1a   :  { %231 = vmatpush1.bf16.msra.mxu0 %v511_v9  ;;  %499 = vmatpush1.bf16.msra.mxu1 %v511_v9 }
  0x1b   :  { %232 = vmatprep.subr.bf16.mxu0 %v539_v0  ;;  %490 = vmatprep.subr.bf16.mxu1 %v539_v0 }
  0x1e   :  { %233 = vmatpush1.bf16.msra.mxu0 %v512_v10  ;;  %500 = vmatpush1.bf16.msra.mxu1 %v512_v10 }
  0x1f   :  { %234 = vmatprep.subr.bf16.mxu0 %v539_v0  ;;  %491 = vmatprep.subr.bf16.mxu1 %v539_v0 }
  0x22   :  { %235 = vmatpush1.bf16.msra.mxu0 %v513_v13  ;;  %501 = vmatpush1.bf16.msra.mxu1 %v513_v13 }
  0x23   :  { %236 = vmatprep.subr.bf16.mxu0 %v539_v0  ;;  %492 = vmatprep.subr.bf16.mxu1 %v539_v0 }
  0x26   :  { %237 = vmatpush1.bf16.msra.mxu0 %v216_v16  ;;  %502 = vmatpush1.bf16.msra.mxu1 %v216_v16 }
  0x29   :  { %251 = vmatmul.mubr.bf16.vlgmr.msra.gmra.mrb[0].mxu0 %v515_v17  ;;  %283 = vmatmul.mubr.bf16.vlgmr.msra.gmra.mrb[0].mxu1 %v518_v18 }
  0x2a   :  { %444 = vmatprep.mubr.msk.bf16.mxu0 %vm186_vm0, %v521_v19  ;;  %448 = vmatprep.mubr.msk.bf16.mxu1 %vm186_vm0, %v523_v20 }
  0x31   :  { %259 = vmatmul.mubr.bf16.gmra.mrb[4].mxu0 %v525_v21  ;;  %291 = vmatmul.mubr.bf16.gmra.mrb[4].mxu1 %v526_v22 }
  0x32   :  { %445 = vmatprep.mubr.msk.bf16.mxu0 %vm186_vm0, %v527_v23  ;;  %449 = vmatprep.mubr.msk.bf16.mxu1 %vm186_vm0, %v529_v24 }
  0x39   :  { %267 = vmatmul.mubr.bf16.gmra.mrb[8].mxu0 %v531_v25  ;;  %299 = vmatmul.mubr.bf16.gmra.mrb[8].mxu1 %v532_v26 }
  0x3a   :  { %446 = vmatprep.mubr.msk.bf16.mxu0 %vm186_vm0, %v533_v27  ;;  %450 = vmatprep.mubr.msk.bf16.mxu1 %vm186_vm0, %v535_v28 }
  0x41   :  { %275 = vmatmul.mubr.bf16.gmra.mrb[12].mxu0 %v537_v29  ;;  %307 = vmatmul.mubr.bf16.gmra.mrb[12].mxu1 %v538_v30 }
  0xfc   :  { %v252_v32 = vpop.f32.mrb[0].mxu0  ;;  %v284_v33 = vpop.f32.mrb[0].mxu1 }
  0xfd   :  { %v253_v34 = vadd.f32 %v650_v31, %v252_v32  ;;  %v285_v35 = vadd.f32 %v650_v31, %v284_v33  ;;  %v254_v36 = vpop.f32.mrb[1].mxu0  ;;  %v286_v37 = vpop.f32.mrb[1].mxu1 }
  0xfe   :  { %v255_v38 = vpop.f32.mrb[2].mxu0  ;;  %v287_v39 = vpop.f32.mrb[2].mxu1 }
  0xff   :  { %v315_v40 = vmax.f32 %v253_v34, 0.0  ;;  %v323_v41 = vmax.f32 %v285_v35, 0.0  ;;  %v256_v42 = vadd.f32 %v650_v31, %v255_v38  ;;  %v288_v43 = vadd.f32 %v650_v31, %v287_v39  ;;  %v257_v44 = vpop.f32.mrb[3].mxu0  ;;  %v289_v45 = vpop.f32.mrb[3].mxu1 }
 0x101   :  { %v467_v46 = vpack.c.bf16 %v315_v40, %v315_v40  ;;  %v475_v47 = vpack.c.bf16 %v323_v41, %v323_v41  ;;  %v316_v48 = vmax.f32 %v256_v42, 0.0  ;;  %v324_v49 = vmax.f32 %v288_v43, 0.0 }
 0x103   :  { %396 = vst.msk [vmem:[%s735_s3] sm:$0xf] %vm395_vm3, %v467_v46  ;;  %404 = vst.msk [vmem:[%s735_s3 + $0x20] sm:$0xf] %vm395_vm3, %v475_v47  ;;  %v468_v50 = vpack.c.bf16 %v316_v48, %v316_v48  ;;  %v476_v51 = vpack.c.bf16 %v324_v49, %v324_v49 }
 0x104   :  { %v260_v52 = vpop.f32.mrb[4].mxu0  ;;  %v292_v53 = vpop.f32.mrb[4].mxu1 }
 0x105   :  { %397 = vst.msk [vmem:[%s735_s3 + $0x4] sm:$0xf] %vm395_vm3, %v468_v50  ;;  %405 = vst.msk [vmem:[%s735_s3 + $0x24] sm:$0xf] %vm395_vm3, %v476_v51  ;;  %v261_v54 = vadd.f32 %v650_v31, %v260_v52  ;;  %v293_v55 = vadd.f32 %v650_v31, %v292_v53  ;;  %v262_v56 = vpop.f32.mrb[5].mxu0  ;;  %v294_v57 = vpop.f32.mrb[5].mxu1 }
 0x106   :  { %v263_v58 = vpop.f32.mrb[6].mxu0  ;;  %v295_v59 = vpop.f32.mrb[6].mxu1 }
 0x107   :  { %v317_v60 = vmax.f32 %v261_v54, 0.0  ;;  %v325_v61 = vmax.f32 %v293_v55, 0.0  ;;  %v264_v62 = vadd.f32 %v650_v31, %v263_v58  ;;  %v296_v63 = vadd.f32 %v650_v31, %v295_v59  ;;  %v265_v0 = vpop.f32.mrb[7].mxu0  ;;  %v297_v1 = vpop.f32.mrb[7].mxu1 }
 0x109   :  { %v469_v2 = vpack.c.bf16 %v317_v60, %v317_v60  ;;  %v477_v3 = vpack.c.bf16 %v325_v61, %v325_v61  ;;  %v318_v4 = vmax.f32 %v264_v62, 0.0  ;;  %v326_v5 = vmax.f32 %v296_v63, 0.0 }
 0x10b   :  { %398 = vst.msk [vmem:[%s735_s3 + $0x8] sm:$0xf] %vm395_vm3, %v469_v2  ;;  %406 = vst.msk [vmem:[%s735_s3 + $0x28] sm:$0xf] %vm395_vm3, %v477_v3  ;;  %v470_v6 = vpack.c.bf16 %v318_v4, %v318_v4  ;;  %v478_v7 = vpack.c.bf16 %v326_v5, %v326_v5 }
 0x10c   :  { %v268_v8 = vpop.f32.mrb[8].mxu0  ;;  %v300_v9 = vpop.f32.mrb[8].mxu1 }
 0x10d   :  { %399 = vst.msk [vmem:[%s735_s3 + $0xc] sm:$0xf] %vm395_vm3, %v470_v6  ;;  %407 = vst.msk [vmem:[%s735_s3 + $0x2c] sm:$0xf] %vm395_vm3, %v478_v7  ;;  %v269_v10 = vadd.f32 %v650_v31, %v268_v8  ;;  %v301_v11 = vadd.f32 %v650_v31, %v300_v9  ;;  %v270_v12 = vpop.f32.mrb[9].mxu0  ;;  %v302_v13 = vpop.f32.mrb[9].mxu1 }
 0x10e   :  { %v271_v14 = vpop.f32.mrb[10].mxu0  ;;  %v303_v15 = vpop.f32.mrb[10].mxu1 }
 0x10f   :  { %v319_v16 = vmax.f32 %v269_v10, 0.0  ;;  %v327_v17 = vmax.f32 %v301_v11, 0.0  ;;  %v272_v18 = vadd.f32 %v650_v31, %v271_v14  ;;  %v304_v19 = vadd.f32 %v650_v31, %v303_v15  ;;  %v273_v20 = vpop.f32.mrb[11].mxu0  ;;  %v305_v21 = vpop.f32.mrb[11].mxu1 }
 0x111   :  { %v471_v22 = vpack.c.bf16 %v319_v16, %v319_v16  ;;  %v479_v23 = vpack.c.bf16 %v327_v17, %v327_v17  ;;  %v320_v24 = vmax.f32 %v272_v18, 0.0  ;;  %v328_v25 = vmax.f32 %v304_v19, 0.0 }
 0x113   :  { %400 = vst.msk [vmem:[%s735_s3 + $0x10] sm:$0xf] %vm395_vm3, %v471_v22  ;;  %408 = vst.msk [vmem:[%s735_s3 + $0x30] sm:$0xf] %vm395_vm3, %v479_v23  ;;  %v472_v26 = vpack.c.bf16 %v320_v24, %v320_v24  ;;  %v480_v27 = vpack.c.bf16 %v328_v25, %v328_v25 }
 0x114   :  { %v276_v28 = vpop.f32.mrb[12].mxu0  ;;  %v308_v29 = vpop.f32.mrb[12].mxu1 }
 0x115   :  { %401 = vst.msk [vmem:[%s735_s3 + $0x14] sm:$0xf] %vm395_vm3, %v472_v26  ;;  %409 = vst.msk [vmem:[%s735_s3 + $0x34] sm:$0xf] %vm395_vm3, %v480_v27  ;;  %v277_v30 = vadd.f32 %v650_v31, %v276_v28  ;;  %v309_v32 = vadd.f32 %v650_v31, %v308_v29  ;;  %v278_v33 = vpop.f32.mrb[13].mxu0  ;;  %v310_v34 = vpop.f32.mrb[13].mxu1 }
 0x116   :  { %v279_v35 = vpop.f32.mrb[14].mxu0  ;;  %v311_v36 = vpop.f32.mrb[14].mxu1 }
 0x117   :  { %v321_v37 = vmax.f32 %v277_v30, 0.0  ;;  %v329_v38 = vmax.f32 %v309_v32, 0.0  ;;  %v280_v39 = vadd.f32 %v650_v31, %v279_v35  ;;  %v312_v40 = vadd.f32 %v650_v31, %v311_v36  ;;  %v281_v41 = vpop.f32.mrb[15].mxu0  ;;  %v313_v42 = vpop.f32.mrb[15].mxu1 }
 0x119   :  { %v473_v43 = vpack.c.bf16 %v321_v37, %v321_v37  ;;  %v481_v44 = vpack.c.bf16 %v329_v38, %v329_v38  ;;  %v322_v45 = vmax.f32 %v280_v39, 0.0  ;;  %v330_v46 = vmax.f32 %v312_v40, 0.0 }
 0x11b   :  { %402 = vst.msk [vmem:[%s735_s3 + $0x18] sm:$0xf] %vm395_vm3, %v473_v43  ;;  %410 = vst.msk [vmem:[%s735_s3 + $0x38] sm:$0xf] %vm395_vm3, %v481_v44  ;;  %v474_v47 = vpack.c.bf16 %v322_v45, %v322_v45  ;;  %v482_v48 = vpack.c.bf16 %v330_v46, %v330_v46 }
 0x11d   :  { %403 = vst.msk [vmem:[%s735_s3 + $0x1c] sm:$0xf] %vm395_vm3, %v474_v47  ;;  %411 = vst.msk [vmem:[%s735_s3 + $0x3c] sm:$0xf] %vm395_vm3, %v482_v48 }

</bundles_post_ra>
